<compile_context>
chip_gen: v7x
topology: tpu7x:2x2x1
jax: 0.10.0
libtpu: 0.0.40
codegen_flags: <defaults>
</compile_context>

<pallas_src>
import functools

import jax
import jax.numpy as jnp
from jax import lax
from jax.experimental import pallas as pl
from jax.experimental.pallas import tpu as pltpu


def _round_up(n, m):
    return ((n + m - 1) // m) * m


def _lstm_recurrence_kernel(x_ref, wih_ref, whh_ref, bias_ref, h0_ref,
                            out_ref, hfin_ref, h_scr, c_scr, *,
                            hidden_size, chunk, seq_true, unroll):
    """One (batch_tile, time_chunk) grid step of the LSTM recurrence.

    x_ref:    (ts, bt, I)  bf16   time-major input chunk (streamed)
    wih_ref:  (I, 4H)      bf16   W_ih^T (resident)
    whh_ref:  (H, 4H)      bf16   W_hh^T (resident), gate order i, f, g, o
    bias_ref: (1, 4H)      f32    b_ih + b_hh (resident)
    h0_ref:   (bt, 2H)     f32    concat([h0, c0], -1) for this batch tile
    out_ref:  (ts, bt, H)  f32    per-chunk hidden outputs (time-major)
    hfin_ref: (bt, 2H)     f32    final concat([hT, cT], -1) (resident)
    h_scr/c_scr: (bt, H)   f32    recurrent carry across time chunks
    """
    H = hidden_size
    t_idx = pl.program_id(1)

    @pl.when(t_idx == 0)
    def _():
        h_scr[...] = h0_ref[:, :H]
        c_scr[...] = h0_ref[:, H:]

    w_ih = wih_ref[...]          # (I, 4H) bf16, loaded once per chunk
    w_hh = whh_ref[...]          # (H, 4H) bf16
    bias = bias_ref[...]         # (1, 4H) f32, broadcasts over batch

    bt = out_ref.shape[1]
    lane = lax.broadcasted_iota(jnp.int32, (bt, 4 * H), 1)
    is_g = (lane >= 2 * H) & (lane < 3 * H)          # cell-candidate lanes
    # tanh(z) = 2*sigmoid(2z) - 1: one dense sigmoid pass over (bt, 4H) instead
    # of a full tanh pass + a full sigmoid pass.  Coefficients hoisted out of
    # the step loop (JAX does not CSE broadcasts).
    pre_scale = jnp.where(is_g, 2.0, 1.0)
    post_a = pre_scale
    post_b = jnp.where(is_g, -1.0, 0.0)

    base = t_idx * chunk

    def step(i, carry):
        h, c = carry
        x_t = x_ref[i]                                           # (bt, I) bf16
        gates = (jnp.dot(x_t, w_ih, preferred_element_type=jnp.float32)
                 + jnp.dot(h.astype(w_hh.dtype), w_hh,
                           preferred_element_type=jnp.float32)
                 + bias)                                         # (bt, 4H) f32
        act = jax.nn.sigmoid(gates * pre_scale) * post_a + post_b
        i_g = act[:, 0 * H:1 * H]
        f_g = act[:, 1 * H:2 * H]
        g_g = act[:, 2 * H:3 * H]
        o_g = act[:, 3 * H:4 * H]
        c_new = f_g * c + i_g * g_g
        h_new = o_g * jnp.tanh(c_new)
        out_ref[i] = h_new                   # dynamic store along leading (time) axis
        # Steps past the true sequence length (pad) do not advance the carry, so
        # the carry at the very end is exactly the state after step seq_true-1.
        valid = (base + i) < seq_true
        h = jnp.where(valid, h_new, h)
        c = jnp.where(valid, c_new, c)
        return (h, c)

    h_fin, c_fin = lax.fori_loop(0, chunk, step, (h_scr[...], c_scr[...]),
                                 unroll=unroll)

    h_scr[...] = h_fin
    c_scr[...] = c_fin

    # Final state written once, on the last time chunk only (PyTorch order: h then c).
    @pl.when(t_idx == pl.num_programs(1) - 1)
    def _():
        hfin_ref[:, :H] = h_fin
        hfin_ref[:, H:] = c_fin


@functools.partial(jax.jit,
                   static_argnames=("hidden_size", "time_chunk", "max_batch_tile"))
def urnn_lstm_forward(x, hidden_state, w_ih, w_hh, b_ih, b_hh, *,
                      hidden_size, time_chunk=32, max_batch_tile=256):
    """URNN.forward with an LSTM layer (chunk_size == 2).

    x:            (B, S, I) float32
    hidden_state: (B, 2H) float32 or None
    w_ih: (4H, I), w_hh: (4H, H), b_ih: (4H,), b_hh: (4H,)   (PyTorch layout)
    """
    B, S, I = x.shape
    H = hidden_size

    if hidden_state is None:
        hidden_state = jnp.zeros((B, 2 * H), dtype=jnp.float32)

    # ---- batch / time padding so blocks stay sublane-aligned and the grid clean ----
    B_pad = _round_up(max(B, 8), 8)                 # f32/vreg sublane alignment
    bt = min(B_pad, max_batch_tile)                 # batch tile (parallel grid axis)
    B_pad = _round_up(B_pad, bt)

    ts = max(1, min(time_chunk, S))

    # Keep double-buffered blocks comfortably inside VMEM (v7x: 64 MiB / TC).
    def vmem_bytes(ts_):
        x_blk = ts_ * bt * I * 2                    # bf16 input chunk
        out_blk = ts_ * bt * H * 4                  # f32 output chunk
        weights = (I + H) * 4 * H * 2 + 4 * H * 4   # resident W_ih^T, W_hh^T, bias
        resident = 2 * (bt * 2 * H * 4)             # h0 block + hfin block
        scratch = 2 * bt * H * 4                    # h/c carries
        return 2 * (x_blk + out_blk) + weights + resident + scratch

    vmem_budget = 40 * 1024 * 1024
    while ts > 8 and vmem_bytes(ts) > vmem_budget:
        ts //= 2
    S_pad = _round_up(S, ts)
    unroll = min(ts, 8)                             # decouple chunk size from unroll

    # ---- pad + cast inputs (fused by XLA) ----
    x_p = x
    if (B_pad, S_pad) != (B, S):
        x_p = jnp.pad(x, ((0, B_pad - B), (0, S_pad - S), (0, 0)))
    x_tm = jnp.transpose(x_p, (1, 0, 2)).astype(jnp.bfloat16)        # (S_pad, B_pad, I)

    h0 = hidden_state.astype(jnp.float32)
    if B_pad != B:
        h0 = jnp.pad(h0, ((0, B_pad - B), (0, 0)))

    w_ih_t = jnp.transpose(w_ih).astype(jnp.bfloat16)                # (I, 4H)
    w_hh_t = jnp.transpose(w_hh).astype(jnp.bfloat16)                # (H, 4H)
    bias = (b_ih + b_hh).astype(jnp.float32).reshape(1, 4 * H)

    grid = (B_pad // bt, S_pad // ts)

    cost = pl.CostEstimate(
        flops=2 * S_pad * B_pad * 4 * H * (I + H) + 12 * S_pad * B_pad * 4 * H,
        transcendentals=5 * S_pad * B_pad * H,
        bytes_accessed=(S_pad * B_pad * I * 2) + (S_pad * B_pad * H * 4)
        + ((I + H) * 4 * H * 2) + (4 * B_pad * H * 4),
    )

    out_tm, hfin = pl.pallas_call(
        functools.partial(_lstm_recurrence_kernel, hidden_size=H, chunk=ts,
                          seq_true=S, unroll=unroll),
        out_shape=(
            jax.ShapeDtypeStruct((S_pad, B_pad, H), jnp.float32),
            jax.ShapeDtypeStruct((B_pad, 2 * H), jnp.float32),
        ),
        grid_spec=pltpu.PrefetchScalarGridSpec(
            num_scalar_prefetch=0,
            grid=grid,
            in_specs=[
                pl.BlockSpec((ts, bt, I), lambda b, t: (t, b, 0)),   # x chunk (streamed)
                pl.BlockSpec((I, 4 * H), lambda b, t: (0, 0)),       # W_ih^T (resident)
                pl.BlockSpec((H, 4 * H), lambda b, t: (0, 0)),       # W_hh^T (resident)
                pl.BlockSpec((1, 4 * H), lambda b, t: (0, 0)),       # bias   (resident)
                pl.BlockSpec((bt, 2 * H), lambda b, t: (b, 0)),      # h0/c0  (resident)
            ],
            out_specs=(
                pl.BlockSpec((ts, bt, H), lambda b, t: (t, b, 0)),   # rnn_out chunk
                pl.BlockSpec((bt, 2 * H), lambda b, t: (b, 0)),      # final hidden
            ),
            scratch_shapes=[
                pltpu.VMEM((bt, H), jnp.float32),   # h carry
                pltpu.VMEM((bt, H), jnp.float32),   # c carry
            ],
        ),
        compiler_params=pltpu.CompilerParams(
            dimension_semantics=("parallel", "arbitrary"),   # batch tiles || ; time serial
            vmem_limit_bytes=int(min(64 * 1024 * 1024,
                                     max(32 * 1024 * 1024, 3 * vmem_bytes(ts)))),
        ),
        cost_estimate=cost,
    )(x_tm, w_ih_t, w_hh_t, bias, h0)

    # TODO(synk): write batch-major (bt, ts, H) blocks from the kernel to remove
    # this wrapper-side HBM transpose of the output.
    rnn_out = jnp.transpose(out_tm[:S, :B, :], (1, 0, 2))            # (B, S, H)
    new_hidden = hfin[:B]
    return rnn_out, new_hidden


def _lstm_reference(x, hidden_state, w_ih, w_hh, b_ih, b_hh, hidden_size):
    """Pure-JAX f32 reference matching torch.nn.LSTM (single layer, batch_first)."""
    H = hidden_size
    h = hidden_state[:, :H]
    c = hidden_state[:, H:]
    outs = []
    for t in range(x.shape[1]):
        x_t = x[:, t, :]
        gates = x_t @ w_ih.T + b_ih + h @ w_hh.T + b_hh
        i_g = jax.nn.sigmoid(gates[:, 0 * H:1 * H])
        f_g = jax.nn.sigmoid(gates[:, 1 * H:2 * H])
        g_g = jnp.tanh(gates[:, 2 * H:3 * H])
        o_g = jax.nn.sigmoid(gates[:, 3 * H:4 * H])
        c = f_g * c + i_g * g_g
        h = o_g * jnp.tanh(c)
        outs.append(h)
    return jnp.stack(outs, axis=1), jnp.concatenate([h, c], axis=-1)


if __name__ == "__main__":
    # Small shapes consistent with the module's forward contract.
    B, S, I, H = 2, 8, 16, 32

    key = jax.random.PRNGKey(0)
    k_x, k_h, k1, k2, k3, k4 = jax.random.split(key, 6)

    # Deterministic parameter init, PyTorch-style U(-1/sqrt(H), 1/sqrt(H)).
    bound = 1.0 / jnp.sqrt(jnp.float32(H))
    w_ih = jax.random.uniform(k1, (4 * H, I), jnp.float32, -bound, bound)
    w_hh = jax.random.uniform(k2, (4 * H, H), jnp.float32, -bound, bound)
    b_ih = jax.random.uniform(k3, (4 * H,), jnp.float32, -bound, bound)
    b_hh = jax.random.uniform(k4, (4 * H,), jnp.float32, -bound, bound)

    x = jax.random.normal(k_x, (B, S, I), jnp.float32)
    hidden_state = jax.random.normal(k_h, (B, 2 * H), jnp.float32)

    # Case 1: explicit hidden state, ragged time chunk (exercises S padding,
    # cross-chunk carry and the masked final-state logic).
    out1, hid1 = urnn_lstm_forward(x, hidden_state, w_ih, w_hh, b_ih, b_hh,
                                   hidden_size=H, time_chunk=3)
    # Case 2: hidden_state=None (zero init), default chunk (single grid step).
    out2, hid2 = urnn_lstm_forward(x, None, w_ih, w_hh, b_ih, b_hh,
                                   hidden_size=H)
    jax.block_until_ready((out1, hid1, out2, hid2))

    # Correctness check against pure-JAX f32 LSTM reference (tolerance loosened
    # because the kernel feeds bf16 operands to the MXU with f32 accumulation).
    ref1_out, ref1_hid = _lstm_reference(x, hidden_state, w_ih, w_hh, b_ih, b_hh, H)
    zeros_h = jnp.zeros((B, 2 * H), jnp.float32)
    ref2_out, ref2_hid = _lstm_reference(x, zeros_h, w_ih, w_hh, b_ih, b_hh, H)

    assert out1.shape == (B, S, H) and hid1.shape == (B, 2 * H)
    assert out2.shape == (B, S, H) and hid2.shape == (B, 2 * H)
    assert jnp.allclose(out1, ref1_out, atol=5e-2, rtol=5e-2)
    assert jnp.allclose(hid1, ref1_hid, atol=5e-2, rtol=5e-2)
    assert jnp.allclose(out2, ref2_out, atol=5e-2, rtol=5e-2)
    assert jnp.allclose(hid2, ref2_hid, atol=5e-2, rtol=5e-2)

    print("KERNEL_OK")
</pallas_src>

<mosaic_0001>
module attributes {stable_mosaic.version = 11 : i64} {
  func.func @_lstm_recurrence_kernel(%arg0: i32, %arg1: i32, %arg2: memref<3x8x16xbf16, #tpu.memory_space<vmem>>, %arg3: memref<16x128xbf16, #tpu.memory_space<vmem>>, %arg4: memref<32x128xbf16, #tpu.memory_space<vmem>>, %arg5: memref<1x128xf32, #tpu.memory_space<vmem>>, %arg6: memref<8x64xf32, #tpu.memory_space<vmem>>, %arg7: memref<3x8x32xf32, #tpu.memory_space<vmem>>, %arg8: memref<8x64xf32, #tpu.memory_space<vmem>>, %arg9: memref<8x32xf32, #tpu.memory_space<vmem>>, %arg10: memref<8x32xf32, #tpu.memory_space<vmem>>) attributes {dimension_semantics = [#tpu.dimension_semantics<parallel>, #tpu.dimension_semantics<arbitrary>], iteration_bounds = array<i64: 1, 3>, scalar_prefetch = 0 : i64, scratch_operands = 2 : i64, tpu.core_type = #tpu.core_type<tc>, window_params = [{transform_indices = @transform_0, window_bounds = array<i64: 3, 8, 16>}, {pipeline_mode = #tpu.pipeline_mode<synchronous>, transform_indices = @transform_1, window_bounds = array<i64: 16, 128>}, {pipeline_mode = #tpu.pipeline_mode<synchronous>, transform_indices = @transform_2, window_bounds = array<i64: 32, 128>}, {pipeline_mode = #tpu.pipeline_mode<synchronous>, transform_indices = @transform_3, window_bounds = array<i64: 1, 128>}, {transform_indices = @transform_4, window_bounds = array<i64: 8, 64>}, {transform_indices = @transform_5, window_bounds = array<i64: 3, 8, 32>}, {transform_indices = @transform_6, window_bounds = array<i64: 8, 64>}]} {
    %c0_i32 = arith.constant 0 : i32
    %0 = arith.cmpi eq, %arg1, %c0_i32 : i32
    %1 = arith.extui %0 : i1 to i32
    %c0_i32_0 = arith.constant 0 : i32
    %2 = arith.cmpi ne, %1, %c0_i32_0 : i32
    scf.if %2 {
      %c0_44 = arith.constant 0 : index
      %c0_45 = arith.constant 0 : index
      %128 = vector.load %arg6[%c0_44, %c0_45] : memref<8x64xf32, #tpu.memory_space<vmem>>, vector<8x32xf32>
      %c0_46 = arith.constant 0 : index
      %c0_47 = arith.constant 0 : index
      %129 = vector.load %arg9[%c0_46, %c0_47] : memref<8x32xf32, #tpu.memory_space<vmem>>, vector<8x32xf32>
      tpu.vector_store %arg9[%c0_46, %c0_47], %128 {strides = array<i32>} : memref<8x32xf32, #tpu.memory_space<vmem>>, vector<8x32xf32>,
      %c0_48 = arith.constant 0 : index
      %c32 = arith.constant 32 : index
      %130 = vector.load %arg6[%c0_48, %c32] : memref<8x64xf32, #tpu.memory_space<vmem>>, vector<8x32xf32>
      %c0_49 = arith.constant 0 : index
      %c0_50 = arith.constant 0 : index
      %131 = vector.load %arg10[%c0_49, %c0_50] : memref<8x32xf32, #tpu.memory_space<vmem>>, vector<8x32xf32>
      tpu.vector_store %arg10[%c0_49, %c0_50], %130 {strides = array<i32>} : memref<8x32xf32, #tpu.memory_space<vmem>>, vector<8x32xf32>,
    } else {
    }
    %c0 = arith.constant 0 : index
    %c0_1 = arith.constant 0 : index
    %3 = vector.load %arg3[%c0, %c0_1] : memref<16x128xbf16, #tpu.memory_space<vmem>>, vector<16x128xbf16>
    %c0_2 = arith.constant 0 : index
    %c0_3 = arith.constant 0 : index
    %4 = vector.load %arg4[%c0_2, %c0_3] : memref<32x128xbf16, #tpu.memory_space<vmem>>, vector<32x128xbf16>
    %c0_4 = arith.constant 0 : index
    %c0_5 = arith.constant 0 : index
    %5 = vector.load %arg5[%c0_4, %c0_5] : memref<1x128xf32, #tpu.memory_space<vmem>>, vector<1x128xf32>
    %6 = tpu.iota {dimensions = array<i32: 1>} : vector<8x128xi32>
    %c64_i32 = arith.constant 64 : i32
    %7 = vector.broadcast %c64_i32 : i32 to vector<8x128xi32>
    %8 = arith.cmpi sge, %6, %7 : vector<8x128xi32>
    %c96_i32 = arith.constant 96 : i32
    %9 = vector.broadcast %c96_i32 : i32 to vector<8x128xi32>
    %10 = arith.cmpi slt, %6, %9 : vector<8x128xi32>
    %11 = arith.andi %8, %10 : vector<8x128xi1>
    %cst = arith.constant 2.000000e+00 : f32
    %cst_6 = arith.constant 1.000000e+00 : f32
    %12 = vector.broadcast %cst : f32 to vector<8x128xf32>
    %13 = vector.broadcast %cst_6 : f32 to vector<8x128xf32>
    %14 = arith.select %11, %12, %13 : vector<8x128xi1>, vector<8x128xf32>
    %cst_7 = arith.constant -1.000000e+00 : f32
    %cst_8 = arith.constant 0.000000e+00 : f32
    %15 = vector.broadcast %cst_7 : f32 to vector<8x128xf32>
    %16 = vector.broadcast %cst_8 : f32 to vector<8x128xf32>
    %17 = arith.select %11, %15, %16 : vector<8x128xi1>, vector<8x128xf32>
    %c3_i32 = arith.constant 3 : i32
    %18 = arith.muli %arg1, %c3_i32 : i32
    %c0_9 = arith.constant 0 : index
    %c0_10 = arith.constant 0 : index
    %19 = vector.load %arg9[%c0_9, %c0_10] : memref<8x32xf32, #tpu.memory_space<vmem>>, vector<8x32xf32>
    %c0_11 = arith.constant 0 : index
    %c0_12 = arith.constant 0 : index
    %20 = vector.load %arg10[%c0_11, %c0_12] : memref<8x32xf32, #tpu.memory_space<vmem>>, vector<8x32xf32>
    %c0_i32_13 = arith.constant 0 : i32
    %21 = arith.index_cast %c0_i32_13 : i32 to index
    %c0_14 = arith.constant 0 : index
    %c0_15 = arith.constant 0 : index
    %22 = vector.load %arg2[%21, %c0_14, %c0_15] : memref<3x8x16xbf16, #tpu.memory_space<vmem>>, vector<1x8x16xbf16>
    %23 = vector.shape_cast %22 : vector<1x8x16xbf16> to vector<8x16xbf16>
    %cst_16 = arith.constant dense<0.000000e+00> : vector<8x128xf32>
    %24 = tpu.matmul %23, %3, %cst_16 {dimension_numbers = #tpu.dot_dimension_numbers<[1], [0], [0], [1], [0, 0, 1, 1], [], []>} : vector<8x16xbf16>, vector<16x128xbf16>, vector<8x128xf32> -> vector<8x128xf32>
    %25 = arith.truncf %19 : vector<8x32xf32> to vector<8x32xbf16>
    %cst_17 = arith.constant dense<0.000000e+00> : vector<8x128xf32>
    %26 = tpu.matmul %25, %4, %cst_17 {dimension_numbers = #tpu.dot_dimension_numbers<[1], [0], [0], [1], [0, 0, 1, 1], [], []>} : vector<8x32xbf16>, vector<32x128xbf16>, vector<8x128xf32> -> vector<8x128xf32>
    %27 = arith.addf %24, %26 : vector<8x128xf32>
    %28 = vector.broadcast %5 : vector<1x128xf32> to vector<8x128xf32>
    %29 = arith.addf %27, %28 : vector<8x128xf32>
    %30 = arith.mulf %29, %14 : vector<8x128xf32>
    %31 = arith.negf %30 : vector<8x128xf32>
    %32 = math.exp %31 : vector<8x128xf32>
    %cst_18 = arith.constant 1.000000e+00 : f32
    %33 = vector.broadcast %cst_18 : f32 to vector<8x128xf32>
    %34 = arith.addf %33, %32 : vector<8x128xf32>
    %35 = arith.divf %33, %34 : vector<8x128xf32>
    %36 = arith.mulf %35, %14 : vector<8x128xf32>
    %37 = arith.addf %36, %17 : vector<8x128xf32>
    %38 = vector.extract_strided_slice %37 {offsets = [0, 0], sizes = [8, 32], strides = [1, 1]} : vector<8x128xf32> to vector<8x32xf32>
    %39 = vector.extract_strided_slice %37 {offsets = [0, 32], sizes = [8, 32], strides = [1, 1]} : vector<8x128xf32> to vector<8x32xf32>
    %40 = vector.extract_strided_slice %37 {offsets = [0, 64], sizes = [8, 32], strides = [1, 1]} : vector<8x128xf32> to vector<8x32xf32>
    %41 = vector.extract_strided_slice %37 {offsets = [0, 96], sizes = [8, 32], strides = [1, 1]} : vector<8x128xf32> to vector<8x32xf32>
    %42 = arith.mulf %39, %20 : vector<8x32xf32>
    %43 = arith.mulf %38, %40 : vector<8x32xf32>
    %44 = arith.addf %42, %43 : vector<8x32xf32>
    %45 = math.tanh %44 : vector<8x32xf32>
    %46 = arith.mulf %41, %45 : vector<8x32xf32>
    %47 = arith.index_cast %c0_i32_13 : i32 to index
    %c0_19 = arith.constant 0 : index
    %c0_20 = arith.constant 0 : index
    %48 = vector.load %arg7[%47, %c0_19, %c0_20] : memref<3x8x32xf32, #tpu.memory_space<vmem>>, vector<1x8x32xf32>
    %49 = vector.shape_cast %48 : vector<1x8x32xf32> to vector<8x32xf32>
    %50 = vector.shape_cast %46 : vector<8x32xf32> to vector<1x8x32xf32>
    tpu.vector_store %arg7[%47, %c0_19, %c0_20], %50 {strides = array<i32>} : memref<3x8x32xf32, #tpu.memory_space<vmem>>, vector<1x8x32xf32>,
    %51 = arith.addi %18, %c0_i32_13 : i32
    %c8_i32 = arith.constant 8 : i32
    %52 = arith.cmpi slt, %51, %c8_i32 : i32
    %53 = arith.select %52, %46, %19 : vector<8x32xf32>
    %54 = arith.select %52, %44, %20 : vector<8x32xf32>
    %c1_i32 = arith.constant 1 : i32
    %55 = arith.index_cast %c1_i32 : i32 to index
    %c0_21 = arith.constant 0 : index
    %c0_22 = arith.constant 0 : index
    %56 = vector.load %arg2[%55, %c0_21, %c0_22] : memref<3x8x16xbf16, #tpu.memory_space<vmem>>, vector<1x8x16xbf16>
    %57 = vector.shape_cast %56 : vector<1x8x16xbf16> to vector<8x16xbf16>
    %cst_23 = arith.constant dense<0.000000e+00> : vector<8x128xf32>
    %58 = tpu.matmul %57, %3, %cst_23 {dimension_numbers = #tpu.dot_dimension_numbers<[1], [0], [0], [1], [0, 0, 1, 1], [], []>} : vector<8x16xbf16>, vector<16x128xbf16>, vector<8x128xf32> -> vector<8x128xf32>
    %59 = arith.truncf %53 : vector<8x32xf32> to vector<8x32xbf16>
    %cst_24 = arith.constant dense<0.000000e+00> : vector<8x128xf32>
    %60 = tpu.matmul %59, %4, %cst_24 {dimension_numbers = #tpu.dot_dimension_numbers<[1], [0], [0], [1], [0, 0, 1, 1], [], []>} : vector<8x32xbf16>, vector<32x128xbf16>, vector<8x128xf32> -> vector<8x128xf32>
    %61 = arith.addf %58, %60 : vector<8x128xf32>
    %62 = vector.broadcast %5 : vector<1x128xf32> to vector<8x128xf32>
    %63 = arith.addf %61, %62 : vector<8x128xf32>
    %64 = arith.mulf %63, %14 : vector<8x128xf32>
    %65 = arith.negf %64 : vector<8x128xf32>
    %66 = math.exp %65 : vector<8x128xf32>
    %cst_25 = arith.constant 1.000000e+00 : f32
    %67 = vector.broadcast %cst_25 : f32 to vector<8x128xf32>
    %68 = arith.addf %67, %66 : vector<8x128xf32>
    %69 = arith.divf %67, %68 : vector<8x128xf32>
    %70 = arith.mulf %69, %14 : vector<8x128xf32>
    %71 = arith.addf %70, %17 : vector<8x128xf32>
    %72 = vector.extract_strided_slice %71 {offsets = [0, 0], sizes = [8, 32], strides = [1, 1]} : vector<8x128xf32> to vector<8x32xf32>
    %73 = vector.extract_strided_slice %71 {offsets = [0, 32], sizes = [8, 32], strides = [1, 1]} : vector<8x128xf32> to vector<8x32xf32>
    %74 = vector.extract_strided_slice %71 {offsets = [0, 64], sizes = [8, 32], strides = [1, 1]} : vector<8x128xf32> to vector<8x32xf32>
    %75 = vector.extract_strided_slice %71 {offsets = [0, 96], sizes = [8, 32], strides = [1, 1]} : vector<8x128xf32> to vector<8x32xf32>
    %76 = arith.mulf %73, %54 : vector<8x32xf32>
    %77 = arith.mulf %72, %74 : vector<8x32xf32>
    %78 = arith.addf %76, %77 : vector<8x32xf32>
    %79 = math.tanh %78 : vector<8x32xf32>
    %80 = arith.mulf %75, %79 : vector<8x32xf32>
    %81 = arith.index_cast %c1_i32 : i32 to index
    %c0_26 = arith.constant 0 : index
    %c0_27 = arith.constant 0 : index
    %82 = vector.load %arg7[%81, %c0_26, %c0_27] : memref<3x8x32xf32, #tpu.memory_space<vmem>>, vector<1x8x32xf32>
    %83 = vector.shape_cast %82 : vector<1x8x32xf32> to vector<8x32xf32>
    %84 = vector.shape_cast %80 : vector<8x32xf32> to vector<1x8x32xf32>
    tpu.vector_store %arg7[%81, %c0_26, %c0_27], %84 {strides = array<i32>} : memref<3x8x32xf32, #tpu.memory_space<vmem>>, vector<1x8x32xf32>,
    %85 = arith.addi %18, %c1_i32 : i32
    %c8_i32_28 = arith.constant 8 : i32
    %86 = arith.cmpi slt, %85, %c8_i32_28 : i32
    %87 = arith.select %86, %80, %53 : vector<8x32xf32>
    %88 = arith.select %86, %78, %54 : vector<8x32xf32>
    %c2_i32 = arith.constant 2 : i32
    %89 = arith.index_cast %c2_i32 : i32 to index
    %c0_29 = arith.constant 0 : index
    %c0_30 = arith.constant 0 : index
    %90 = vector.load %arg2[%89, %c0_29, %c0_30] : memref<3x8x16xbf16, #tpu.memory_space<vmem>>, vector<1x8x16xbf16>
    %91 = vector.shape_cast %90 : vector<1x8x16xbf16> to vector<8x16xbf16>
    %cst_31 = arith.constant dense<0.000000e+00> : vector<8x128xf32>
    %92 = tpu.matmul %91, %3, %cst_31 {dimension_numbers = #tpu.dot_dimension_numbers<[1], [0], [0], [1], [0, 0, 1, 1], [], []>} : vector<8x16xbf16>, vector<16x128xbf16>, vector<8x128xf32> -> vector<8x128xf32>
    %93 = arith.truncf %87 : vector<8x32xf32> to vector<8x32xbf16>
    %cst_32 = arith.constant dense<0.000000e+00> : vector<8x128xf32>
    %94 = tpu.matmul %93, %4, %cst_32 {dimension_numbers = #tpu.dot_dimension_numbers<[1], [0], [0], [1], [0, 0, 1, 1], [], []>} : vector<8x32xbf16>, vector<32x128xbf16>, vector<8x128xf32> -> vector<8x128xf32>
    %95 = arith.addf %92, %94 : vector<8x128xf32>
    %96 = vector.broadcast %5 : vector<1x128xf32> to vector<8x128xf32>
    %97 = arith.addf %95, %96 : vector<8x128xf32>
    %98 = arith.mulf %97, %14 : vector<8x128xf32>
    %99 = arith.negf %98 : vector<8x128xf32>
    %100 = math.exp %99 : vector<8x128xf32>
    %cst_33 = arith.constant 1.000000e+00 : f32
    %101 = vector.broadcast %cst_33 : f32 to vector<8x128xf32>
    %102 = arith.addf %101, %100 : vector<8x128xf32>
    %103 = arith.divf %101, %102 : vector<8x128xf32>
    %104 = arith.mulf %103, %14 : vector<8x128xf32>
    %105 = arith.addf %104, %17 : vector<8x128xf32>
    %106 = vector.extract_strided_slice %105 {offsets = [0, 0], sizes = [8, 32], strides = [1, 1]} : vector<8x128xf32> to vector<8x32xf32>
    %107 = vector.extract_strided_slice %105 {offsets = [0, 32], sizes = [8, 32], strides = [1, 1]} : vector<8x128xf32> to vector<8x32xf32>
    %108 = vector.extract_strided_slice %105 {offsets = [0, 64], sizes = [8, 32], strides = [1, 1]} : vector<8x128xf32> to vector<8x32xf32>
    %109 = vector.extract_strided_slice %105 {offsets = [0, 96], sizes = [8, 32], strides = [1, 1]} : vector<8x128xf32> to vector<8x32xf32>
    %110 = arith.mulf %107, %88 : vector<8x32xf32>
    %111 = arith.mulf %106, %108 : vector<8x32xf32>
    %112 = arith.addf %110, %111 : vector<8x32xf32>
    %113 = math.tanh %112 : vector<8x32xf32>
    %114 = arith.mulf %109, %113 : vector<8x32xf32>
    %115 = arith.index_cast %c2_i32 : i32 to index
    %c0_34 = arith.constant 0 : index
    %c0_35 = arith.constant 0 : index
    %116 = vector.load %arg7[%115, %c0_34, %c0_35] : memref<3x8x32xf32, #tpu.memory_space<vmem>>, vector<1x8x32xf32>
    %117 = vector.shape_cast %116 : vector<1x8x32xf32> to vector<8x32xf32>
    %118 = vector.shape_cast %114 : vector<8x32xf32> to vector<1x8x32xf32>
    tpu.vector_store %arg7[%115, %c0_34, %c0_35], %118 {strides = array<i32>} : memref<3x8x32xf32, #tpu.memory_space<vmem>>, vector<1x8x32xf32>,
    %119 = arith.addi %18, %c2_i32 : i32
    %c8_i32_36 = arith.constant 8 : i32
    %120 = arith.cmpi slt, %119, %c8_i32_36 : i32
    %121 = arith.select %120, %114, %87 : vector<8x32xf32>
    %122 = arith.select %120, %112, %88 : vector<8x32xf32>
    %c3_i32_37 = arith.constant 3 : i32
    %c0_38 = arith.constant 0 : index
    %c0_39 = arith.constant 0 : index
    %123 = vector.load %arg9[%c0_38, %c0_39] : memref<8x32xf32, #tpu.memory_space<vmem>>, vector<8x32xf32>
    tpu.vector_store %arg9[%c0_38, %c0_39], %121 {strides = array<i32>} : memref<8x32xf32, #tpu.memory_space<vmem>>, vector<8x32xf32>,
    %c0_40 = arith.constant 0 : index
    %c0_41 = arith.constant 0 : index
    %124 = vector.load %arg10[%c0_40, %c0_41] : memref<8x32xf32, #tpu.memory_space<vmem>>, vector<8x32xf32>
    tpu.vector_store %arg10[%c0_40, %c0_41], %122 {strides = array<i32>} : memref<8x32xf32, #tpu.memory_space<vmem>>, vector<8x32xf32>,
    %c2_i32_42 = arith.constant 2 : i32
    %125 = arith.cmpi eq, %arg1, %c2_i32_42 : i32
    %126 = arith.extui %125 : i1 to i32
    %c0_i32_43 = arith.constant 0 : i32
    %127 = arith.cmpi ne, %126, %c0_i32_43 : i32
    scf.if %127 {
      %c0_44 = arith.constant 0 : index
      %c0_45 = arith.constant 0 : index
      %128 = vector.load %arg8[%c0_44, %c0_45] : memref<8x64xf32, #tpu.memory_space<vmem>>, vector<8x32xf32>
      tpu.vector_store %arg8[%c0_44, %c0_45], %121 {strides = array<i32>} : memref<8x64xf32, #tpu.memory_space<vmem>>, vector<8x32xf32>,
      %c0_46 = arith.constant 0 : index
      %c32 = arith.constant 32 : index
      %129 = vector.load %arg8[%c0_46, %c32] : memref<8x64xf32, #tpu.memory_space<vmem>>, vector<8x32xf32>
      tpu.vector_store %arg8[%c0_46, %c32], %122 {strides = array<i32>} : memref<8x64xf32, #tpu.memory_space<vmem>>, vector<8x32xf32>,
    } else {
    }
    return
  }
  func.func @transform_0(%arg0: i32, %arg1: i32) -> (i32, i32, i32) {
    %c0_i32 = arith.constant 0 : i32
    %c0_i32_0 = arith.constant 0 : i32
    return %arg1, %arg0, %c0_i32 : i32, i32, i32
  }
  func.func @transform_1(%arg0: i32, %arg1: i32) -> (i32, i32) {
    %c0_i32 = arith.constant 0 : i32
    %c0_i32_0 = arith.constant 0 : i32
    %c0_i32_1 = arith.constant 0 : i32
    return %c0_i32, %c0_i32_0 : i32, i32
  }
  func.func @transform_2(%arg0: i32, %arg1: i32) -> (i32, i32) {
    %c0_i32 = arith.constant 0 : i32
    %c0_i32_0 = arith.constant 0 : i32
    %c0_i32_1 = arith.constant 0 : i32
    return %c0_i32, %c0_i32_0 : i32, i32
  }
  func.func @transform_3(%arg0: i32, %arg1: i32) -> (i32, i32) {
    %c0_i32 = arith.constant 0 : i32
    %c0_i32_0 = arith.constant 0 : i32
    %c0_i32_1 = arith.constant 0 : i32
    return %c0_i32, %c0_i32_0 : i32, i32
  }
  func.func @transform_4(%arg0: i32, %arg1: i32) -> (i32, i32) {
    %c0_i32 = arith.constant 0 : i32
    %c0_i32_0 = arith.constant 0 : i32
    return %arg0, %c0_i32 : i32, i32
  }
  func.func @transform_5(%arg0: i32, %arg1: i32) -> (i32, i32, i32) {
    %c0_i32 = arith.constant 0 : i32
    %c0_i32_0 = arith.constant 0 : i32
    return %arg1, %arg0, %c0_i32 : i32, i32, i32
  }
  func.func @transform_6(%arg0: i32, %arg1: i32) -> (i32, i32) {
    %c0_i32 = arith.constant 0 : i32
    %c0_i32_0 = arith.constant 0 : i32
    return %arg0, %c0_i32 : i32, i32
  }
}

</mosaic_0001>

<bundles_post_ra>
// kernel: urnn_lstm_forward.1
= control target key start
LH: loop header
LB: loop body
LE: loop exit
PB: predicated region body
PF: predicated region fallthrough
CT: control target
= control target key end

     0   :  { %s1112_s21 = smov 0   ;;  %s1114_s22 = smov 0   ;;  %s1298_s0 = inlined_call_operand.vmem [shape: bf16[9,8,16], index: 0, kind: input, shape index: {}]   ;;  %s1299_s1 = inlined_call_operand.vmem [shape: bf16[16,128], index: 1, kind: input, shape index: {}]   ;;  %s1300_s2 = inlined_call_operand.vmem [shape: bf16[32,128], index: 2, kind: input, shape index: {}]   ;;  %s1301_s3 = inlined_call_operand.vmem [shape: f32[1,128], index: 3, kind: input, shape index: {}]   ;;  %s1302_s4 = inlined_call_operand.vmem [shape: f32[8,64], index: 4, kind: input, shape index: {}]   ;;  %s1303_s5 = inlined_call_operand.vmem [shape: f32[9,8,32], index: 5, kind: output, shape index: {0}]   ;;  %s1304_s6 = inlined_call_operand.vmem [shape: f32[8,64], index: 6, kind: output, shape index: {1}]  }
   0x1   :  { %s1116_s23 = smov 0  }
   0x2 LB: > { %s26_s24 = sadd.s32 1, %s1064_s22  ;;  %p912_p0 = scmp.ge.s32.totalorder %s1068_s23, 1  ;;  %s1068_s23 = sphi %s1116_s23, %s17_s23   ;;  %s1064_s22 = sphi %s1114_s22, %s1310_s22   ;;  %s1060_s21 = sphi %s1112_s21, %s1309_s21  }
   0x3   : > { %p27_p1 = scmp.ge.s32.totalorder %s26_s24, 3  ;;  %p244_p2 = scmp.lt.s32.totalorder %s1068_s23, 4 }
   0x5   : > { %s1312_s24 = smov (%p27_p1, %s26_s24), 0  ;;  %p245_p3 = pnand %p912_p0, %p244_p2 }
   0x6   : > { %s1133_s25 = smul.u32 (!%p245_p3), 3, %s1060_s21  ;;  %p915_p5 = scmp.ne.s32.totalorder (!%p245_p3), %s1060_s21, 0 }
   0x7   : > { %248 = sbr.rel (%p245_p3) target bundleno = 2327 (0x917), region = 40 }
   0x8   : > { %p289_p4 = scmp.lt.s32.totalorder (!%p245_p3), %s1133_s25, 8 }
   0xe   : > { %s290_s26 = scalar_select %p289_p4, %s1133_s25, 8 }
   0xf   : > { %318 = sbr.rel (%p915_p5) target bundleno = 132 (0x84), region = 44  ;;  %v322_v0 = vld [vmem:[%s1302_s4] sm:$0xff] (!%p915_p5)  ;;  %vm320_vm0 = vcmask (!%p915_p5), 261120   ;;  %s1070_s13 = smov (!%p915_p5), 96  }
  0x10   : > { %s913_s27 = sshll.u32 %s290_s26, 2  ;;  %s914_s28 = sshll.u32 %s290_s26, 3  ;;  %324 = vrot.lane.b32.xlu0 (!%p915_p5), %v322_v0, %s1070_s13  ;;  %321 = vst.msk [vmem:[#allocation2] sm:$0xff] (!%p915_p5), %vm320_vm0, %v322_v0 }
  0x11   : > { %s1142_s7 = scalar_lea.vmem %s1298_s0, %s913_s27  ;;  %s1147_s10 = scalar_lea.vmem %s1303_s5, %s914_s28 }
  0x82   : > { %v325_v1 = vpop.permute.xlu0 %324 }
  0x83   : > { %327 = vst.msk [vmem:[#allocation3] sm:$0xff] %vm320_vm0, %v325_v1 }
  0x84 PF: > { %v1156_v2 = vld [vmem:[%s1300_s2] sm:$0xff]   ;;  %v1071_v3 = vmov 0.0   ;;  %vm1072_vm1 = vmmov 0   ;;  %v1171_v5 = vld [vmem:[%s1300_s2 + $0x8] sm:$0xff]   ;;  %vm409_vm2 = vcmask 130048   ;;  %vm359_vm3 = vcmask 261120  }
  0x85   : > { %952 = vmatprep.subr.bf16.mxu0 %v1071_v3  ;;  %960 = vmatprep.subr.bf16.mxu1 %v1071_v3  ;;  %v1163_v4 = vld [vmem:[%s1299_s1] sm:$0xff]   ;;  %v335_v9 = vlaneseq  ;;  %v1073_v20 = vmov 1.0   ;;  %s1074_s27 = smov 64   ;;  %s1075_s28 = smov 32  }
  0x86   : > { %953 = vmatpush3.bf16.msra.mxu0 %v1156_v2  ;;  %962 = vmatprep.mubr.msk.bf16.mxu1 %vm1072_vm1, %v1071_v3  ;;  %v345_v6 = vld [vmem:[%s1142_s7] sm:$0xf]  ;;  %s1076_s29 = smov 96   ;;  %v923_v40 = vld [vmem:[%s1142_s7 + $0x4] sm:$0xf]  ;;  %s630_s8 = sadd.s32 1, %s1133_s25 }
  0x87   : > { %961 = vmatpush3.bf16.msra.mxu1 %v1163_v4  ;;  %954 = vmatprep.subr.bf16.mxu0 %v1071_v3  ;;  %v343_v7 = vld [vmem:[#allocation2] sm:$0xff]  ;;  %v336_v10 = vand.u32 127, %v335_v9  ;;  %s496_s30 = scalar_select %p289_p4, 1, 0  ;;  %v928_v9 = vld [vmem:[%s1142_s7 + $0x8] sm:$0xf] }
  0x88   : > { %956 = vmatprep.mubr.msk.bf16.mxu0 %vm1072_vm1, %v1071_v3  ;;  %966 = vmatprep.subr.bf16.mxu1 %v1071_v3  ;;  %v346_v8 = vpack.c.bf16 %v343_v7, %v343_v7  ;;  %v1200_v15 = vld [vmem:[%s1301_s3] ss:$0 sm:$0xff]  ;;  %p631_p6 = scmp.lt.s32.totalorder %s630_s8, 8  ;;  %s762_s7 = sadd.s32 2, %s1133_s25 }
  0x89   : > { %vm337_vm4 = vcmp.ge.s32.totalorder %v336_v10, 64  ;;  %vm338_vm5 = vcmp.lt.s32.totalorder %v336_v10, 96  ;;  %v497_v42 = vstv %s496_s30  ;;  %p763_p7 = scmp.lt.s32.totalorder %s762_s7, 8  ;;  %p933_p8 = scmp.ne.s32.totalorder %s1060_s21, 2 }
  0x8a   : > { %955 = vmatpush3.bf16.msra.mxu0 %v1171_v5  ;;  %963 = vmatmul.mubr.msk.bf16.vlgmr.msra.gmra.mrb[0].mxu1 %vm409_vm2, %v345_v6  ;;  %vm1193_vm6 = vmand %vm337_vm4, %vm338_vm5  ;;  %v344_v33 = vld [vmem:[#allocation3] sm:$0xff]  ;;  %vm1229_vm7 = vcmp.eq.s32.totalorder %v497_v42, 1  ;;  %s632_s9 = scalar_select %p631_p6, 1, 0 }
  0x8b   : > { %974 = vmatprep.subr.bf16.mxu0 %v1071_v3  ;;  %967 = vmatpush3.bf16.msra.mxu1 %v1156_v2  ;;  %v1204_v21 = vsel %vm1193_vm6, 2.0, %v1073_v20  ;;  %v1211_v30 = vsel %vm1193_vm6, -1.0, %v1071_v3  ;;  %s764_s11 = scalar_select %p763_p7, 1, 0 }
  0x8c   : > { %968 = vmatprep.subr.bf16.mxu1 %v1071_v3  ;;  %970 = vmatprep.mubr.msk.bf16.mxu1 %vm1072_vm1, %v1071_v3  ;;  %vm784_vm10 = vcmask (!%p933_p8), 523520  }
  0x8d   : > { %957 = vmatmul.mubr.msk.bf16.vlgmr.msra.gmra.mrb[0].mxu0 %vm359_vm3, %v346_v8 }
  0x8e   : > { %975 = vmatpush3.bf16.msra.mxu0 %v1163_v4  ;;  %976 = vmatprep.mubr.msk.bf16.mxu0 %vm1072_vm1, %v1071_v3 }
  0x8f   : > { %969 = vmatpush3.bf16.msra.mxu1 %v1171_v5  ;;  %988 = vmatprep.subr.bf16.mxu0 %v1071_v3 }
  0x90   : > { %980 = vmatprep.subr.bf16.mxu1 %v1071_v3 }
  0x95   : > { %977 = vmatmul.mubr.msk.bf16.vlgmr.msra.gmra.mrb[4].mxu0 %vm409_vm2, %v923_v40 }
  0x96   : > { %989 = vmatpush3.bf16.msra.mxu0 %v1163_v4  ;;  %990 = vmatprep.mubr.msk.bf16.mxu0 %vm1072_vm1, %v1071_v3 }
  0x9d   : > { %991 = vmatmul.mubr.msk.bf16.vlgmr.msra.gmra.mrb[8].mxu0 %vm409_vm2, %v928_v9 }
 0x15d   : > { %v447_v11 = vpop.f32.mrb[0].mxu1 }
 0x15e   : > { %v964_v12 = vpop.f32.mrb[1].mxu1 }
 0x15f   : > { %v450_v13 = vpop.f32.mrb[2].mxu1 }
 0x160   : > { %v397_v16 = vpop.f32.mrb[0].mxu0  ;;  %v965_v17 = vpop.f32.mrb[3].mxu1 }
 0x161   : > { %v448_v18 = vadd.f32 %v447_v11, %v397_v16  ;;  %v958_v19 = vpop.f32.mrb[1].mxu0  ;;  %v633_v11 = vstv %s632_s9 }
 0x162   : > { %v400_v22 = vpop.f32.mrb[2].mxu0  ;;  %vm634_vm8 = vcmp.eq.s32.totalorder %v633_v11, 1 }
 0x163   : > { %v459_v23 = vadd.f32 %v1200_v15, %v448_v18  ;;  %v959_v24 = vpop.f32.mrb[3].mxu0 }
 0x165   : > { %v460_v25 = vmul.f32 %v459_v23, %v1204_v21 }
 0x167   : > { %v922_v26 = vmul.f32 -1.442695, %v460_v25 }
 0x168   : > { %v591_v49 = vpop.f32.mrb[4].mxu0 }
 0x169   : > { %1028 = vpow2.f32 %v922_v26  ;;  %v978_v50 = vpop.f32.mrb[5].mxu0 }
 0x16a   : > { %v594_v51 = vpop.f32.mrb[6].mxu0 }
 0x16b   : > { %v979_v52 = vpop.f32.mrb[7].mxu0 }
 0x170   : > { %v723_v17 = vpop.f32.mrb[8].mxu0 }
 0x171   : > { %v992_v18 = vpop.f32.mrb[9].mxu0 }
 0x172   : > { %v726_v19 = vpop.f32.mrb[10].mxu0 }
 0x173   : > { %v1029_v27 = vpop.eup %1028  ;;  %v993_v20 = vpop.f32.mrb[11].mxu0 }
 0x174   : > { %v464_v28 = vadd.f32 1.0, %v1029_v27 }
 0x176   : > { %1030 = vrcp.f32 %v464_v28 }
 0x180   : > { %v1031_v29 = vpop.eup %1030 }
 0x181   : > { %v467_v31 = vmul.f32 %v1031_v29, %v1204_v21 }
 0x183   : > { %v468_v32 = vadd.f32 %v467_v31, %v1211_v30 }
 0x185   : > { %475 = vrot.lane.b32.xlu0 %v468_v32, %s1074_s27 }
 0x189   : > { %470 = vrot.lane.b32.xlu0 %v344_v33, %s1075_s28 }
 0x18d   : > { %500 = vrot.lane.b32.xlu0 %v343_v7, %s1076_s29 }
 0x1f7   : > { %v476_v34 = vpop.permute.xlu0 %475 }
 0x1f8   : > { %v478_v35 = vmul.f32 %v476_v34, %v468_v32 }
 0x1fa   : > { %480 = vrot.lane.b32.xlu1 %v478_v35, %s1075_s28 }
 0x1fb   : > { %v471_v36 = vpop.permute.xlu0 %470 }
 0x1fc   : > { %v473_v37 = vmul.f32 %v471_v36, %v468_v32 }
 0x1ff   : > { %v501_v44 = vpop.permute.xlu0 %500 }
 0x26c   : > { %v481_v38 = vpop.permute.xlu1 %480 }
 0x26d   : > { %v483_v39 = vadd.f32 %v481_v38, %v473_v37 }
 0x26f   : > { %1032 = vtanh.f32 %v483_v39 }
 0x279   : > { %v1033_v41 = vpop.eup %1032 }
 0x27a   : > { %486 = vrot.lane.b32.xlu1 %v1033_v41, %s1074_s27 }
 0x2ec   : > { %v487_v43 = vpop.permute.xlu1 %486 }
 0x2ed   : > { %v1227_v45 = vmul.f32 %v487_v43, %v468_v32 }
 0x2ef   : > { %v503_v47 = vsel %vm1229_vm7, %v1227_v45, %v501_v44 }
 0x2f0   : > { %v507_v48 = vpack.c.bf16 %v503_v47, %v503_v47 }
 0x2f2   : > { %509 = vrot.lane.b32.xlu1 %v507_v48, %s1075_s28 }
 0x364   : > { %v510_v53 = vpop.permute.xlu1 %509 }
 0x365   : > { %971 = vmatmul.mubr.msk.bf16.vlgmr.msra.gmra.mrb[4].mxu1 %vm359_vm3, %v510_v53 }
 0x366   : > { %981 = vmatpush3.bf16.msra.mxu1 %v1156_v2  ;;  %984 = vmatprep.mubr.msk.bf16.mxu1 %vm1072_vm1, %v1071_v3 }
 0x367   : > { %982 = vmatprep.subr.bf16.mxu1 %v1071_v3 }
 0x36a   : > { %983 = vmatpush3.bf16.msra.mxu1 %v1171_v5  ;;  %v504_v5 = vsel %vm1229_vm7, %v483_v39, %v471_v36 }
 0x438   : > { %v548_v54 = vpop.f32.mrb[4].mxu1 }
 0x439   : > { %v592_v55 = vadd.f32 %v591_v49, %v548_v54  ;;  %v972_v56 = vpop.f32.mrb[5].mxu1 }
 0x43a   : > { %v551_v57 = vpop.f32.mrb[6].mxu1 }
 0x43b   : > { %v597_v58 = vadd.f32 %v1200_v15, %v592_v55  ;;  %v973_v59 = vpop.f32.mrb[7].mxu1 }
 0x43d   : > { %v598_v60 = vmul.f32 %v597_v58, %v1204_v21 }
 0x43f   : > { %v926_v61 = vmul.f32 -1.442695, %v598_v60 }
 0x441   : > { %1034 = vpow2.f32 %v926_v61 }
 0x44b   : > { %v1035_v62 = vpop.eup %1034 }
 0x44c   : > { %v602_v63 = vadd.f32 1.0, %v1035_v62 }
 0x44e   : > { %1036 = vrcp.f32 %v602_v63 }
 0x458   : > { %v1037_v0 = vpop.eup %1036 }
 0x459   : > { %v605_v1 = vmul.f32 %v1037_v0, %v1204_v21 }
 0x45b   : > { %v606_v2 = vadd.f32 %v605_v1, %v1211_v30 }
 0x45d   : > { %609 = vrot.lane.b32.xlu0 %v606_v2, %s1074_s27  ;;  %v607_v6 = vmul.f32 %v606_v2, %v504_v5 }
 0x4cf   : > { %v610_v3 = vpop.permute.xlu0 %609 }
 0x4d0   : > { %v612_v4 = vmul.f32 %v610_v3, %v606_v2 }
 0x4d2   : > { %614 = vrot.lane.b32.xlu1 %v612_v4, %s1075_s28 }
 0x544   : > { %v615_v7 = vpop.permute.xlu1 %614 }
 0x545   : > { %v617_v8 = vadd.f32 %v615_v7, %v607_v6 }
 0x547   : > { %1038 = vtanh.f32 %v617_v8 }
 0x551   : > { %v1039_v10 = vpop.eup %1038 }
 0x552   : > { %620 = vrot.lane.b32.xlu0 %v1039_v10, %s1074_s27 }
 0x5c4   : > { %v621_v12 = vpop.permute.xlu0 %620 }
 0x5c5   : > { %v623_v13 = vmul.f32 %v621_v12, %v606_v2 }
 0x5c7   : > { %v635_v14 = vsel %vm634_vm8, %v623_v13, %v503_v47 }
 0x5c8   : > { %v639_v16 = vpack.c.bf16 %v635_v14, %v635_v14 }
 0x5ca   : > { %641 = vrot.lane.b32.xlu1 %v639_v16, %s1075_s28 }
 0x63c   : > { %v642_v22 = vpop.permute.xlu1 %641 }
 0x63d   : > { %985 = vmatmul.mubr.msk.bf16.vlgmr.msra.gmra.mrb[8].mxu1 %vm359_vm3, %v642_v22 }
 0x710   : > { %v680_v23 = vpop.f32.mrb[8].mxu1 }
 0x711   : > { %v724_v24 = vadd.f32 %v723_v17, %v680_v23  ;;  %v986_v25 = vpop.f32.mrb[9].mxu1 }
 0x712   : > { %v683_v26 = vpop.f32.mrb[10].mxu1 }
 0x713   : > { %v729_v27 = vadd.f32 %v1200_v15, %v724_v24  ;;  %v987_v28 = vpop.f32.mrb[11].mxu1  ;;  %v636_v15 = vsel %vm634_vm8, %v617_v8, %v504_v5 }
 0x715   : > { %v730_v29 = vmul.f32 %v729_v27, %v1204_v21 }
 0x717   : > { %v931_v31 = vmul.f32 -1.442695, %v730_v29 }
 0x719   : > { %1040 = vpow2.f32 %v931_v31 }
 0x723   : > { %v1041_v32 = vpop.eup %1040 }
 0x724   : > { %v734_v33 = vadd.f32 1.0, %v1041_v32 }
 0x726   : > { %1042 = vrcp.f32 %v734_v33 }
 0x730   : > { %v1043_v34 = vpop.eup %1042 }
 0x731   : > { %v737_v35 = vmul.f32 %v1043_v34, %v1204_v21 }
 0x733   : > { %v738_v36 = vadd.f32 %v737_v35, %v1211_v30  ;;  %v765_v30 = vstv %s764_s11 }
 0x734   : > { %vm766_vm9 = vcmp.eq.s32.totalorder %v765_v30, 1 }
 0x735   : > { %741 = vrot.lane.b32.xlu0 %v738_v36, %s1074_s27  ;;  %v739_v39 = vmul.f32 %v738_v36, %v636_v15 }
 0x7a7   : > { %v742_v37 = vpop.permute.xlu0 %741 }
 0x7a8   : > { %v744_v38 = vmul.f32 %v742_v37, %v738_v36 }
 0x7aa   : > { %746 = vrot.lane.b32.xlu1 %v744_v38, %s1075_s28 }
 0x7ae   : > { %491 = vrot.lane.b32.xlu1 %v1227_v45, %s1075_s28 }
 0x81c   : > { %v747_v40 = vpop.permute.xlu1 %746 }
 0x81d   : > { %v749_v41 = vadd.f32 %v747_v40, %v739_v39 }
 0x81f   : > { %1044 = vtanh.f32 %v749_v41  ;;  %v768_v47 = vsel %vm766_vm9, %v749_v41, %v636_v15 }
 0x820   : > { %v492_v42 = vpop.permute.xlu1 %491 }
 0x821   : > { %494 = vst.msk [vmem:[%s1147_s10] sm:$0xff] %vm359_vm3, %v492_v42 }
 0x829   : > { %v1045_v21 = vpop.eup %1044 }
 0x82a   : > { %752 = vrot.lane.b32.xlu0 %v1045_v21, %s1074_s27 }
 0x82e   : > { %625 = vrot.lane.b32.xlu0 %v623_v13, %s1075_s28 }
 0x89c   : > { %v753_v43 = vpop.permute.xlu0 %752 }
 0x89d   : > { %v755_v44 = vmul.f32 %v753_v43, %v738_v36 }
 0x89f   : > { %757 = vrot.lane.b32.xlu1 %v755_v44, %s1075_s28  ;;  %v767_v45 = vsel %vm766_vm9, %v755_v44, %v635_v14 }
 0x8a0   : > { %770 = vrot.lane.b32.xlu0 %v767_v45, %s1075_s28  ;;  %v626_v46 = vpop.permute.xlu0 %625 }
 0x8a1   : > { %927 = vst.msk [vmem:[%s1147_s10 + $0x8] sm:$0xff] %vm359_vm3, %v626_v46 }
 0x8a3   : > { %775 = vrot.lane.b32.xlu1 %v768_v47, %s1076_s29 }
 0x910   : > { %782 = sbr.rel (%p933_p8) target bundleno = 2327 (0x917), region = 48 }
 0x911   : > { %v758_v48 = vpop.permute.xlu1 %757 }
 0x912   : > { %932 = vst.msk [vmem:[%s1147_s10 + $0x10] sm:$0xff] %vm359_vm3, %v758_v48  ;;  %v771_v49 = vpop.permute.xlu0 %770 }
 0x913   : > { %773 = vst.msk [vmem:[#allocation2] sm:$0xff] %vm359_vm3, %v771_v49  ;;  %783 = vst.msk [vmem:[%s1304_s6] sm:$0xff] (!%p933_p8), %vm359_vm3, %v771_v49 }
 0x914   : > { %785 = vst.msk [vmem:[%s1304_s6] sm:$0xff] (!%p933_p8), %vm784_vm10, %v768_v47 }
 0x915   : > { %v776_v50 = vpop.permute.xlu1 %775 }
 0x916   : > { %778 = vst.msk [vmem:[#allocation3] sm:$0xff] %vm359_vm3, %v776_v50 }
 0x917 PF: > { %s17_s23 = sadd.s32 1, %s1068_s23   ;;  %s1309_s21 = smov %s1064_s22 }
 0x918   : > { %p14_p9 = scmp.ge.s32.totalorder %s17_s23, 5   ;;  %s1310_s22 = smov %s1312_s24 }
 0x91a   :  { %16 = sbr.rel (!%p14_p9) target bundleno = 2 (0x2), region = 97 }

</bundles_post_ra>
